<compile_context>
chip_gen: v5e
topology: v5e:2x2
jax: 0.10.0
libtpu: 0.0.40
codegen_flags: <defaults>
</compile_context>

<pallas_src>
import functools

import jax
import jax.numpy as jnp
from jax import lax
from jax.experimental import pallas as pl
from jax.experimental.pallas import tpu as pltpu


def _vmem_capacity_bytes():
    """Physical per-core VMEM, with a conservative (v7x-sized) fallback."""
    try:
        cap = getattr(pltpu.get_tpu_info(), "vmem_capacity_bytes", None)
        if cap:
            return int(cap)
    except Exception:
        pass
    return 64 * 1024 * 1024


def _focal_partials_kernel(logits_ref, labels_ref, sum_ref, cnt_ref, *,
                           ignore_index, spatial_size, tile_s, inner_tiles):
    p = pl.program_id(1)          # spatial chunk (parallel)
    t = pl.program_id(2)          # tile within chunk (reduction, last axis)

    @pl.when(t == 0)
    def _():
        sum_ref[...] = jnp.zeros_like(sum_ref)
        cnt_ref[...] = jnp.zeros_like(cnt_ref)

    logits = logits_ref[0].astype(jnp.float32)      # (C, tile_s): class on sublanes
    labels = labels_ref[0].astype(jnp.int32)        # (1, tile_s), narrow dtype ok

    # numerically stable log-sum-exp over the class (sublane) axis
    m = jnp.max(logits, axis=0, keepdims=True)                           # (1, tile_s)
    lse = m + jnp.log(jnp.sum(jnp.exp(logits - m), axis=0, keepdims=True))

    # gather logit[target] via one-hot select (no dynamic gather on TPU)
    cls = lax.broadcasted_iota(jnp.int32, logits.shape, 0)               # (C, tile_s)
    picked = jnp.sum(jnp.where(cls == labels, logits, 0.0),
                     axis=0, keepdims=True)                              # (1, tile_s)

    # validity: not ignore_index AND inside the real spatial extent.  The
    # column mask replaces wrapper-side padding; undefined data in the DMA'd
    # tail of the last partial tile is masked out via select.
    col = ((p * inner_tiles + t) * tile_s
           + lax.broadcasted_iota(jnp.int32, labels.shape, 1))           # (1, tile_s)
    valid = jnp.logical_and(labels != ignore_index, col < spatial_size)

    nll = jnp.where(valid, lse - picked, 0.0)                            # (1, tile_s)

    # lane-wise partial accumulation (pure VPU adds each step); count kept
    # in int32 so the mean stays exact past 2^24 valid pixels.
    sum_ref[...] += nll[None, None]
    cnt_ref[...] += valid.astype(jnp.int32)[None, None]


def focal_loss_2d(output, target, *, alpha=0.5, gamma=2.0, ignore_index=255,
                  max_tile_s=16384):
    """output: (N, C, H, W) float logits; target: (N, H, W) integer labels."""
    N, C, H, W = output.shape
    S = H * W

    # native-layout views (free reshapes; no transpose / pad HBM passes)
    logits = output.reshape(N, C, S)
    labels = target.reshape(N, 1, S)
    # accept narrow label dtypes directly (uint8/int16/... DMA'd as-is, cast
    # in-kernel); only widen/cast when we must (float/bool/64-bit labels).
    if (not jnp.issubdtype(labels.dtype, jnp.integer)
            or jnp.dtype(labels.dtype).itemsize > 4):
        labels = labels.astype(jnp.int32)

    # ---- tile sizing: generation-aware VMEM budget is the limiter ----------
    logit_bytes = jnp.dtype(output.dtype).itemsize
    label_bytes = jnp.dtype(labels.dtype).itemsize
    vmem_cap = _vmem_capacity_bytes()                       # 128 MiB v5e/v6e, 64 MiB v7x
    vmem_budget = int(max(24 << 20, min(vmem_cap // 2, 96 << 20)))
    # per-lane bytes: double-buffered logits + double-buffered labels + the
    # two resident (f32 sum, i32 count) accumulator blocks
    per_lane_bytes = 2 * C * logit_bytes + 2 * label_bytes + 2 * (4 + 4)
    max_by_vmem = max(128, (int(vmem_budget * 0.9) // per_lane_bytes) // 128 * 128)
    cap = int(min(max_tile_s, max_by_vmem))
    tile_s = S if S <= cap else max(128, (cap // 128) * 128)

    # v7x: guarantee >= 2 independent output blocks so both TensorCores get
    # work even for N == 1 (harmless on single-TC v5e/v6e).
    if N * pl.cdiv(S, tile_s) < 2 and S >= 256:
        tile_s = max(128, ((S // 2) // 128) * 128)

    num_blocks = pl.cdiv(S, tile_s)
    # spatial-chunk parallel axis: largest divisor of num_blocks up to 8
    P = 1
    for cand in range(min(8, num_blocks), 1, -1):
        if num_blocks % cand == 0:
            P = cand
            break
    inner_tiles = num_blocks // P

    kernel = functools.partial(_focal_partials_kernel,
                               ignore_index=int(ignore_index),
                               spatial_size=S, tile_s=tile_s,
                               inner_tiles=inner_tiles)

    out_sum, out_cnt = pl.pallas_call(
        kernel,
        out_shape=(jax.ShapeDtypeStruct((N, P, 1, tile_s), jnp.float32),
                   jax.ShapeDtypeStruct((N, P, 1, tile_s), jnp.int32)),
        grid_spec=pltpu.PrefetchScalarGridSpec(
            num_scalar_prefetch=0,
            grid=(N, P, inner_tiles),
            in_specs=[
                pl.BlockSpec((1, C, tile_s),
                             lambda n, p, t: (n, 0, p * inner_tiles + t)),
                pl.BlockSpec((1, 1, tile_s),
                             lambda n, p, t: (n, 0, p * inner_tiles + t)),
            ],
            out_specs=[
                pl.BlockSpec((1, 1, 1, tile_s), lambda n, p, t: (n, p, 0, 0)),
                pl.BlockSpec((1, 1, 1, tile_s), lambda n, p, t: (n, p, 0, 0)),
            ],
        ),
        compiler_params=pltpu.CompilerParams(
            dimension_semantics=("parallel", "parallel", "arbitrary"),
            vmem_limit_bytes=vmem_budget),
    )(logits, labels)

    # final combine on the tiny (N, P, tile_s) partials
    total_sum = jnp.sum(out_sum)
    total_cnt = jnp.sum(out_cnt).astype(jnp.float32)     # int32 sum -> exact
    # CrossEntropyLoss(reduction='mean', ignore_index) -> scalar logpt
    # (NaN/Inf if every label is ignore_index, matching the torch reference)
    logpt = total_sum / total_cnt
    pt = jnp.exp(-logpt)
    one_m = 1.0 - pt
    if float(gamma) == 2.0:
        focal_factor = one_m * one_m                     # avoid pow -> exp/log chain
    else:
        focal_factor = one_m ** gamma
    # size_average=True -> mean of a scalar == the scalar itself
    return focal_factor * alpha * logpt


def _reference(output, target, *, alpha=0.5, gamma=2.0, ignore_index=255):
    N, C, H, W = output.shape
    logits = jnp.transpose(output, (0, 2, 3, 1)).reshape(-1, C).astype(jnp.float32)
    labels = target.reshape(-1).astype(jnp.int32)
    lse = jax.scipy.special.logsumexp(logits, axis=-1)
    picked = jnp.take_along_axis(
        logits, jnp.clip(labels, 0, C - 1)[:, None], axis=-1)[:, 0]
    valid = labels != ignore_index
    logpt = jnp.sum(jnp.where(valid, lse - picked, 0.0)) / jnp.sum(valid)
    pt = jnp.exp(-logpt)
    return ((1.0 - pt) ** gamma) * alpha * logpt


if __name__ == "__main__":
    key = jax.random.PRNGKey(0)
    k1, k2, k3 = jax.random.split(key, 3)

    # main check: small NCHW segmentation logits with ignore pixels
    N, C, H, W = 2, 4, 16, 16
    logits = jax.random.normal(k1, (N, C, H, W), dtype=jnp.float32)
    target = jax.random.randint(k2, (N, H, W), 0, C, dtype=jnp.int32)
    ignore_mask = jax.random.bernoulli(k3, 0.1, (N, H, W))
    target = jnp.where(ignore_mask, 255, target)

    loss = jax.block_until_ready(focal_loss_2d(logits, target))
    ref = _reference(logits, target)
    assert jnp.allclose(loss, ref, rtol=1e-5, atol=1e-6), (loss, ref)

    # second check: odd spatial size + small tile exercises the in-kernel
    # tail mask (partial last block) and the P=2 spatial-chunk parallel axis
    N2, C2, H2, W2 = 1, 5, 9, 17
    logits2 = jax.random.normal(k1, (N2, C2, H2, W2), dtype=jnp.float32)
    target2 = jax.random.randint(k2, (N2, H2, W2), 0, C2, dtype=jnp.int32)
    loss2 = jax.block_until_ready(focal_loss_2d(logits2, target2, max_tile_s=128))
    ref2 = _reference(logits2, target2)
    assert jnp.allclose(loss2, ref2, rtol=1e-5, atol=1e-6), (loss2, ref2)

    # third check: narrow (uint8) labels DMA'd directly + forced tile split
    # for N == 1 so two independent output blocks exist
    N3, C3, H3, W3 = 1, 4, 32, 32
    logits3 = jax.random.normal(k1, (N3, C3, H3, W3), dtype=jnp.float32)
    target3 = jax.random.randint(k2, (N3, H3, W3), 0, C3, dtype=jnp.int32)
    ignore3 = jax.random.bernoulli(k3, 0.1, (N3, H3, W3))
    target3_u8 = jnp.where(ignore3, jnp.uint8(255), target3.astype(jnp.uint8))
    loss3 = jax.block_until_ready(focal_loss_2d(logits3, target3_u8))
    ref3 = _reference(logits3, target3_u8)
    assert jnp.allclose(loss3, ref3, rtol=1e-5, atol=1e-6), (loss3, ref3)

    print("KERNEL_OK")
</pallas_src>

<mosaic_0001>
module attributes {stable_mosaic.version = 11 : i64} {
  func.func @_focal_partials_kernel(%arg0: i32, %arg1: i32, %arg2: i32, %arg3: memref<1x4x256xf32, #tpu.memory_space<vmem>>, %arg4: memref<1x1x256xi32, #tpu.memory_space<vmem>>, %arg5: memref<1x1x1x256xf32, #tpu.memory_space<vmem>>, %arg6: memref<1x1x1x256xi32, #tpu.memory_space<vmem>>) attributes {dimension_semantics = [#tpu.dimension_semantics<parallel>, #tpu.dimension_semantics<parallel>, #tpu.dimension_semantics<arbitrary>], iteration_bounds = array<i64: 2, 1, 1>, scalar_prefetch = 0 : i64, scratch_operands = 0 : i64, tpu.core_type = #tpu.core_type<tc>, window_params = [{transform_indices = @transform_0, window_bounds = array<i64: 1, 4, 256>}, {transform_indices = @transform_1, window_bounds = array<i64: 1, 1, 256>}, {transform_indices = @transform_2, window_bounds = array<i64: 1, 1, 1, 256>}, {transform_indices = @transform_3, window_bounds = array<i64: 1, 1, 1, 256>}]} {
    %c0_i32 = arith.constant 0 : i32
    %0 = arith.cmpi eq, %arg2, %c0_i32 : i32
    %1 = arith.extui %0 : i1 to i32
    %c0_i32_0 = arith.constant 0 : i32
    %2 = arith.cmpi ne, %1, %c0_i32_0 : i32
    scf.if %2 {
      %cst_27 = arith.constant 0.000000e+00 : f32
      %46 = vector.broadcast %cst_27 : f32 to vector<1x1x1x256xf32>
      %c0_28 = arith.constant 0 : index
      %c0_29 = arith.constant 0 : index
      %c0_30 = arith.constant 0 : index
      %c0_31 = arith.constant 0 : index
      %47 = vector.load %arg5[%c0_28, %c0_29, %c0_30, %c0_31] : memref<1x1x1x256xf32, #tpu.memory_space<vmem>>, vector<1x1x1x256xf32>
      tpu.vector_store %arg5[%c0_28, %c0_29, %c0_30, %c0_31], %46 {strides = array<i32>} : memref<1x1x1x256xf32, #tpu.memory_space<vmem>>, vector<1x1x1x256xf32>,
      %c0_i32_32 = arith.constant 0 : i32
      %48 = vector.broadcast %c0_i32_32 : i32 to vector<1x1x1x256xi32>
      %c0_33 = arith.constant 0 : index
      %c0_34 = arith.constant 0 : index
      %c0_35 = arith.constant 0 : index
      %c0_36 = arith.constant 0 : index
      %49 = vector.load %arg6[%c0_33, %c0_34, %c0_35, %c0_36] : memref<1x1x1x256xi32, #tpu.memory_space<vmem>>, vector<1x1x1x256xi32>
      tpu.vector_store %arg6[%c0_33, %c0_34, %c0_35, %c0_36], %48 {strides = array<i32>} : memref<1x1x1x256xi32, #tpu.memory_space<vmem>>, vector<1x1x1x256xi32>,
    } else {
    }
    %c0 = arith.constant 0 : index
    %c0_1 = arith.constant 0 : index
    %c0_2 = arith.constant 0 : index
    %3 = vector.load %arg3[%c0, %c0_1, %c0_2] : memref<1x4x256xf32, #tpu.memory_space<vmem>>, vector<1x4x256xf32>
    %4 = vector.shape_cast %3 : vector<1x4x256xf32> to vector<4x256xf32>
    %c0_3 = arith.constant 0 : index
    %c0_4 = arith.constant 0 : index
    %c0_5 = arith.constant 0 : index
    %5 = vector.load %arg4[%c0_3, %c0_4, %c0_5] : memref<1x1x256xi32, #tpu.memory_space<vmem>>, vector<1x1x256xi32>
    %6 = vector.shape_cast %5 : vector<1x1x256xi32> to vector<1x256xi32>
    %cst = arith.constant dense<0xFF800000> : vector<256xf32>
    %7 = vector.multi_reduction <maximumf>, %4, %cst [0] : vector<4x256xf32> to vector<256xf32>
    %8 = vector.shape_cast %7 : vector<256xf32> to vector<1x256xf32>
    %9 = vector.broadcast %8 : vector<1x256xf32> to vector<4x256xf32>
    %10 = arith.subf %4, %9 : vector<4x256xf32>
    %11 = math.exp %10 : vector<4x256xf32>
    %cst_6 = arith.constant dense<0.000000e+00> : vector<256xf32>
    %12 = vector.multi_reduction <add>, %11, %cst_6 [0] : vector<4x256xf32> to vector<256xf32>
    %13 = vector.shape_cast %12 : vector<256xf32> to vector<1x256xf32>
    %14 = math.log %13 : vector<1x256xf32>
    %15 = arith.addf %8, %14 : vector<1x256xf32>
    %16 = tpu.iota {dimensions = array<i32: 0>} : vector<4x256xi32>
    %17 = vector.broadcast %6 : vector<1x256xi32> to vector<4x256xi32>
    %18 = arith.cmpi eq, %16, %17 : vector<4x256xi32>
    %cst_7 = arith.constant 0.000000e+00 : f32
    %19 = vector.broadcast %cst_7 : f32 to vector<4x256xf32>
    %20 = arith.select %18, %4, %19 : vector<4x256xi1>, vector<4x256xf32>
    %cst_8 = arith.constant dense<0.000000e+00> : vector<256xf32>
    %21 = vector.multi_reduction <add>, %20, %cst_8 [0] : vector<4x256xf32> to vector<256xf32>
    %22 = vector.shape_cast %21 : vector<256xf32> to vector<1x256xf32>
    %c1_i32 = arith.constant 1 : i32
    %23 = arith.muli %arg1, %c1_i32 : i32
    %24 = arith.addi %23, %arg2 : i32
    %c256_i32 = arith.constant 256 : i32
    %25 = arith.muli %24, %c256_i32 : i32
    %26 = tpu.iota {dimensions = array<i32: 1>} : vector<1x256xi32>
    %27 = vector.broadcast %25 : i32 to vector<1x256xi32>
    %28 = arith.addi %27, %26 : vector<1x256xi32>
    %c255_i32 = arith.constant 255 : i32
    %29 = vector.broadcast %c255_i32 : i32 to vector<1x256xi32>
    %30 = arith.cmpi ne, %6, %29 : vector<1x256xi32>
    %c256_i32_9 = arith.constant 256 : i32
    %31 = vector.broadcast %c256_i32_9 : i32 to vector<1x256xi32>
    %32 = arith.cmpi slt, %28, %31 : vector<1x256xi32>
    %33 = arith.andi %30, %32 : vector<1x256xi1>
    %34 = arith.subf %15, %22 : vector<1x256xf32>
    %cst_10 = arith.constant 0.000000e+00 : f32
    %35 = vector.broadcast %cst_10 : f32 to vector<1x256xf32>
    %36 = arith.select %33, %34, %35 : vector<1x256xi1>, vector<1x256xf32>
    %c0_11 = arith.constant 0 : index
    %c0_12 = arith.constant 0 : index
    %c0_13 = arith.constant 0 : index
    %c0_14 = arith.constant 0 : index
    %37 = vector.load %arg5[%c0_11, %c0_12, %c0_13, %c0_14] : memref<1x1x1x256xf32, #tpu.memory_space<vmem>>, vector<1x1x1x256xf32>
    %38 = vector.shape_cast %36 : vector<1x256xf32> to vector<1x1x1x256xf32>
    %39 = arith.addf %37, %38 : vector<1x1x1x256xf32>
    %c0_15 = arith.constant 0 : index
    %c0_16 = arith.constant 0 : index
    %c0_17 = arith.constant 0 : index
    %c0_18 = arith.constant 0 : index
    %40 = vector.load %arg5[%c0_15, %c0_16, %c0_17, %c0_18] : memref<1x1x1x256xf32, #tpu.memory_space<vmem>>, vector<1x1x1x256xf32>
    tpu.vector_store %arg5[%c0_15, %c0_16, %c0_17, %c0_18], %39 {strides = array<i32>} : memref<1x1x1x256xf32, #tpu.memory_space<vmem>>, vector<1x1x1x256xf32>,
    %c0_19 = arith.constant 0 : index
    %c0_20 = arith.constant 0 : index
    %c0_21 = arith.constant 0 : index
    %c0_22 = arith.constant 0 : index
    %41 = vector.load %arg6[%c0_19, %c0_20, %c0_21, %c0_22] : memref<1x1x1x256xi32, #tpu.memory_space<vmem>>, vector<1x1x1x256xi32>
    %42 = arith.extui %33 : vector<1x256xi1> to vector<1x256xi32>
    %43 = vector.shape_cast %42 : vector<1x256xi32> to vector<1x1x1x256xi32>
    %44 = arith.addi %41, %43 : vector<1x1x1x256xi32>
    %c0_23 = arith.constant 0 : index
    %c0_24 = arith.constant 0 : index
    %c0_25 = arith.constant 0 : index
    %c0_26 = arith.constant 0 : index
    %45 = vector.load %arg6[%c0_23, %c0_24, %c0_25, %c0_26] : memref<1x1x1x256xi32, #tpu.memory_space<vmem>>, vector<1x1x1x256xi32>
    tpu.vector_store %arg6[%c0_23, %c0_24, %c0_25, %c0_26], %44 {strides = array<i32>} : memref<1x1x1x256xi32, #tpu.memory_space<vmem>>, vector<1x1x1x256xi32>,
    return
  }
  func.func @transform_0(%arg0: i32, %arg1: i32, %arg2: i32) -> (i32, i32, i32) {
    %c1_i32 = arith.constant 1 : i32
    %0 = arith.muli %arg1, %c1_i32 : i32
    %1 = arith.addi %0, %arg2 : i32
    %c0_i32 = arith.constant 0 : i32
    %c0_i32_0 = arith.constant 0 : i32
    return %arg0, %c0_i32, %1 : i32, i32, i32
  }
  func.func @transform_1(%arg0: i32, %arg1: i32, %arg2: i32) -> (i32, i32, i32) {
    %c1_i32 = arith.constant 1 : i32
    %0 = arith.muli %arg1, %c1_i32 : i32
    %1 = arith.addi %0, %arg2 : i32
    %c0_i32 = arith.constant 0 : i32
    %c0_i32_0 = arith.constant 0 : i32
    return %arg0, %c0_i32, %1 : i32, i32, i32
  }
  func.func @transform_2(%arg0: i32, %arg1: i32, %arg2: i32) -> (i32, i32, i32, i32) {
    %c0_i32 = arith.constant 0 : i32
    %c0_i32_0 = arith.constant 0 : i32
    %c0_i32_1 = arith.constant 0 : i32
    return %arg0, %arg1, %c0_i32, %c0_i32_0 : i32, i32, i32, i32
  }
  func.func @transform_3(%arg0: i32, %arg1: i32, %arg2: i32) -> (i32, i32, i32, i32) {
    %c0_i32 = arith.constant 0 : i32
    %c0_i32_0 = arith.constant 0 : i32
    %c0_i32_1 = arith.constant 0 : i32
    return %arg0, %arg1, %c0_i32, %c0_i32_0 : i32, i32, i32, i32
  }
}

</mosaic_0001>

<bundles_post_ra>
// kernel: tpu_custom_call.1
= control target key start
LH: loop header
LB: loop body
LE: loop exit
PB: predicated region body
PF: predicated region fallthrough
CT: control target
= control target key end

     0   :  { %9 = vsyncpa [#allocation3], 0  ;;  %s1115_s0 = inlined_call_operand.hbm [shape: f32[2,4,256], index: 0, kind: input, shape index: {}]   ;;  %s1116_s1 = inlined_call_operand.hbm [shape: s32[2,1,256], index: 1, kind: input, shape index: {}]   ;;  %s1117_s2 = inlined_call_operand.hbm [shape: f32[2,1,1,256], index: 2, kind: output, shape index: {0}]   ;;  %s1118_s3 = inlined_call_operand.hbm [shape: s32[2,1,1,256], index: 3, kind: output, shape index: {1}]  }
   0x1   :  { %11 = vsyncpa [#allocation3 + $0x1], 0 }
   0x2   :  { %12 = vsyncpa [#allocation6], 0 }
   0x3   :  { %14 = vsyncpa [#allocation6 + $0x1], 0 }
   0x4   :  { %15 = vsyncpa [#allocation4], 0 }
   0x5   :  { %17 = vsyncpa [#allocation4 + $0x1], 0 }
   0x6   :  { %18 = vsyncpa [#allocation9], 0 }
   0x7   :  { %20 = vsyncpa [#allocation9 + $0x1], 0  ;;  %s903_s12 = smov 0   ;;  %s905_s13 = smov 0  }
   0x8   :  { %s907_s14 = smov 0   ;;  %s909_s15 = smov 0  }
   0x9   :  { %s911_s16 = smov 0   ;;  %s913_s17 = smov 0  }
   0xa LB: > { %s598_s18 = sadd.s32 4294967295, %s878_s17   ;;  %s599_s19 = sadd.s32 4294967294, %s878_s17   ;;  %s878_s17 = sphi %s913_s17, %s26_s17   ;;  %s874_s16 = sphi %s911_s16, %s1132_s16   ;;  %s870_s15 = sphi %s909_s15, %s1131_s15   ;;  %s866_s14 = sphi %s907_s14, %s1130_s14   ;;  %s862_s13 = sphi %s905_s13, %s1129_s13   ;;  %s858_s12 = sphi %s903_s12, %s1128_s12  }
   0xb   : > { %s45_s20 = sadd.s32 1, %s874_s16  ;;  %s56_s21 = sadd.s32 1, %s866_s14 }
   0xc   : > { %p47_p0 = scmp.ge.s32.totalorder %s45_s20, 2  ;;  %p63_p1 = scmp.ne.s32.totalorder %s866_s14, %s862_s13 }
   0xd   : > { %p64_p2 = scmp.eq.s32.totalorder %s878_s17, 0  ;;  %p69_p3 = scmp.ne.s32.totalorder %s862_s13, %s858_s12 }
   0xe   : > { %s1134_s20 = smov (%p47_p0, %s45_s20), 0  ;;  %p70_p5 = scmp.eq.s32.totalorder %s598_s18, 0 }
   0xf   : > { %p944_p4 = por %p64_p2, %p63_p1  ;;  %s51_s23 = ssub.s32 %s874_s16, %s1134_s20 }
  0x10   : > { %p125_p6 = scmp.eq.s32.totalorder %s598_s18, 1  ;;  %p54_p7 = scmp.eq.s32.totalorder %s51_s23, 0 }
  0x11   : > { %p950_p8 = por %p70_p5, %p69_p3  ;;  %p131_p10 = scmp.eq.s32.totalorder %s599_s19, 1 }
  0x12   : > { %p954_p9 = por %p125_p6, %p63_p1  ;;  %p601_p12 = scmp.ge.s32.totalorder %s878_s17, 2 }
  0x13   : > { %s959_s26 = scalar_select %p54_p7, %s866_s14, %s56_s21  }
  0x14   : > { %p961_p11 = por %p131_p10, %p69_p3  ;;  %p641_p13 = scmp.lt.s32.totalorder %s878_s17, 2 }
  0x15   : > { %s179_s28 = sand.u32 1, %s866_s14   ;;  %s618_s30 = sshll.u32 %s874_s16, 3 }
  0x16   : > { %s602_s29 = sshll.u32 %s179_s28, 3  ;;  %s191_s6 = scalar_lea.hbm %s1115_s0, %s618_s30 }
  0x17   : > { %s183_s7 = scalar_lea.vmem [#allocation2], %s602_s29  ;;  %s193_s9 = sshll.u32 %s191_s6, 4  ;;  %s194_s9 = int_to_ptr.hbm [resolvable:$true] %s193_s9 }
  0x18   : > { %s195_s8 = sshll.u32 %s183_s7, 4  ;;  %p974_p0 = pnand %p641_p13, %p944_p4  ;;  %s196_s8 = int_to_ptr.vmem [resolvable:$true] %s195_s8 }
  0x19   : > { %p607_p1 = scmp.ge.s32.totalorder %s878_s17, 1  ;;  %p222_p2 = scmp.lt.s32.totalorder %s878_s17, 3 }
  0x1a   : > { %s180_s11 = scalar_lea.sflag [#allocation3], %s179_s28  ;;  %s605_s18 = sshll.u32 %s179_s28, 1 }
  0x1b   : > { %630 = dma.hbm_to_vmem [thread:$0]  (!%p974_p0), %s194_s9, 128, %s196_s8, %s180_s11  }
  0x1c   : > { %p223_p3 = pnand %p607_p1, %p222_p2  ;;  %s606_s19 = sshll.u32 %s874_s16, 1 }
  0x1d   : > { %s213_s29 = scalar_lea.hbm %s1116_s1, %s606_s19  ;;  %s206_s30 = scalar_lea.vmem [#allocation5], %s605_s18 }
  0x1e   : > { %s217_s22 = sshll.u32 %s206_s30, 4  ;;  %s215_s4 = sshll.u32 %s213_s29, 4  ;;  %s218_s22 = int_to_ptr.vmem [resolvable:$true] %s217_s22  ;;  %s216_s4 = int_to_ptr.hbm [resolvable:$true] %s215_s4 }
  0x1f   : > { %s203_s5 = scalar_lea.sflag [#allocation6], %s179_s28  ;;  %226 = sbr.rel (%p223_p3) target bundleno = 120 (0x78), region = 28 }
  0x20   : > { %633 = dma.hbm_to_vmem [thread:$0]  (!%p974_p0), %s216_s4, 32, %s218_s22, %s203_s5  }
  0x21   : > { %s989_s6 = sand.u32 (!%p223_p3), 1, %s862_s13  }
  0x22   : > { %s608_s7 = sshll.u32 (!%p223_p3), %s989_s6, 3  ;;  %s229_s8 = scalar_lea.sflag (!%p223_p3), [#allocation3], %s989_s6 }
  0x23   : > { %s232_s9 = scalar_lea.vmem (!%p223_p3), [#allocation2], %s608_s7 }
  0x24   : > { %841 = dma.done.wait (%p950_p8), %s229_s8, 128  }
  0x25   : > { %843 = vsyncadd (%p950_p8), %s229_s8, 4294967168  ;;  %s998_s28 = sshll.u32 %s989_s6, 1  ;;  %s239_s10 = scalar_lea.sflag [#allocation6], %s989_s6 }
  0x26   : > { %s242_s11 = scalar_lea.vmem [#allocation5], %s998_s28 }
  0x27   : > { %845 = dma.done.wait (%p950_p8), %s239_s10, 32  }
  0x28   : > { %847 = vsyncadd (%p950_p8), %s239_s10, 4294967264  ;;  %v290_v0 = vld [vmem:[%s232_s9] sm:$0xff]  ;;  %vm298_vm0 = vcmask 1043456   ;;  %v284_v16 = vlaneseq  ;;  %s1020_s24 = scalar_lea.vmem [#allocation7], %s998_s28  ;;  %v880_v21 = vmov 0.0   ;;  %s1026_s18 = scalar_lea.vmem [#allocation8], %s998_s28 }
  0x29   : > { %293 = vst [vmem:[#allocation1] ss:$2 sm:$0xff] %v290_v0  ;;  %v881_v23 = vmov 0   ;;  %s614_s19 = sshll.u32 %s870_s15, 1  ;;  %vm388_vm2 = vcmask 1040384   ;;  %v882_v27 = vmov 1  }
  0x2a   : > { %vm1013_vm1 = vcmp.lt.s32.totalorder %v284_v16, 256  ;;  %v291_v26 = vld [vmem:[%s242_s11] sm:$0x3]  ;;  %v387_v28 = vrot.slane %v882_v27, 7  ;;  %s445_s29 = scalar_lea.hbm %s1118_s3, %s614_s19  ;;  %s447_s30 = sshll.u32 %s1026_s18, 4  ;;  %v348_v38 = vshrl.u32 %v284_v16, 7  ;;  %s448_s30 = int_to_ptr.vmem [resolvable:$true] %s447_s30 }
  0x2b   : > { %288 = vst.msk [vmem:[%s1020_s24] sm:$0x3] %vm1013_vm1, %v880_v21  ;;  %vm382_vm3 = vcmp.ne.s32.totalorder %v291_v26, 255  ;;  %s449_s22 = sshll.u32 %s445_s29, 4  ;;  %v349_v41 = vperm.slane %v291_v26, 0  ;;  %v350_v42 = vperm.slane %v291_v26, 1  ;;  %s450_s22 = int_to_ptr.hbm [resolvable:$true] %s449_s22 }
  0x2c   : > { %289 = vst.msk [vmem:[%s1026_s18] sm:$0x3] %vm1013_vm1, %v881_v23  ;;  %v389_v29 = vsel %vm388_vm2, 1, %v387_v28  ;;  %s417_s4 = scalar_lea.sflag [#allocation9], %s989_s6  ;;  %s774_s5 = sshra.s32 %s450_s22, 4  ;;  %s775_s5 = int_to_ptr.hbm [resolvable:$true] %s774_s5 }
  0x2d   : > { %vm390_vm4 = vcmp.ne.s32.totalorder %v389_v29, 0  ;;  %s776_s7 = scalar_lea.hbm %s775_s5, 2  ;;  %s780_s28 = scalar_lea.hbm %s1118_s3, 4 }
  0x2e   : > { %vm1040_vm5 = vmand %vm382_vm3, %vm390_vm4  ;;  %p777_p4 = scmp.ne.s32.totalorder %s775_s5, %s776_s7  ;;  %p781_p7 = scmp.lt.s32.totalorder %s775_s5, %s1118_s3 }
  0x2f   : > { %v408_v32 = vsel %vm1040_vm5, 1, %v881_v23  ;;  %p782_p8 = scmp.lt.s32.totalorder %s780_s28, %s776_s7 }
  0x30   : > { %v294_v1 = vld.sshfl [vmem:[#allocation1] sm:$0xff pattern:$0x75316420]  ;;  %v295_v2 = vld.sshfl [vmem:[#allocation1 + $0x8] sm:$0xff pattern:$0x75316420]  ;;  %p778_p5 = pnand %p777_p4, %p954_p9 }
  0x31   : > { %v299_v3 = vsel %vm298_vm0, %v294_v1, -inf  ;;  %v306_v4 = vsel %vm298_vm0, %v295_v2, -inf  ;;  %p783_p10 = por %p782_p8, %p781_p7 }
  0x32   : > { %v300_v5 = vrot.slane %v299_v3, 4  ;;  %v307_v6 = vrot.slane %v306_v4, 4  ;;  %p779_p6 = pneg %p778_p5 }
  0x33   : > { %v407_v31 = vld [vmem:[%s1026_s18] sm:$0x3] }
  0x34   : > { %v301_v7 = vmax.f32 %v299_v3, %v300_v5  ;;  %v308_v8 = vmax.f32 %v306_v4, %v307_v6  ;;  %v409_v35 = vadd.s32 %v408_v32, %v407_v31  ;;  %p784_p13 = pnand %p783_p10, %p779_p6 }
  0x36   : > { %v302_v9 = vrot.slane %v301_v7, 2  ;;  %v309_v10 = vrot.slane %v308_v8, 2  ;;  %410 = vst.msk [vmem:[%s1026_s18] sm:$0x3] %vm1013_vm1, %v409_v35 }
  0x38   : > { %v303_v11 = vmax.f32 %v301_v7, %v302_v9  ;;  %v310_v12 = vmax.f32 %v308_v8, %v309_v10 }
  0x3a   : > { %v304_v13 = vrot.slane %v303_v11, 1  ;;  %v311_v14 = vrot.slane %v310_v12, 1 }
  0x3c   : > { %v1008_v15 = vmax.f32 %v310_v12, %v311_v14  ;;  %v1010_v17 = vmax.f32 %v303_v11, %v304_v13 }
  0x3e   : > { %v315_v18 = vrot.slane %v1008_v15, 4 }
  0x40   : > { %v316_v20 = vsel %vm298_vm0, %v1010_v17, %v315_v18 }
  0x41   : > { %v318_v22 = vsub.f32 %v290_v0, %v316_v20 }
  0x43   : > { %v319_v24 = vmul.f32 1.442695, %v318_v22 }
  0x45   : > { %694 = vpow2.f32 %v319_v24 }
  0x4b   : > { %v695_v25 = vpop.eup %694 }
  0x4c   : > { %322 = vst [vmem:[#allocation1] ss:$2 sm:$0xff] %v695_v25 }
  0x53   : > { %v323_v33 = vld.sshfl [vmem:[#allocation1] sm:$0xff pattern:$0x75316420]  ;;  %v324_v34 = vld.sshfl [vmem:[#allocation1 + $0x8] sm:$0xff pattern:$0x75316420] }
  0x54   : > { %v327_v36 = vsel %vm298_vm0, %v323_v33, 0.0  ;;  %v334_v37 = vsel %vm298_vm0, %v324_v34, 0.0  ;;  %353 = vst [vmem:[#allocation1] ss:$2 sm:$0xff] %v290_v0 }
  0x55   : > { %v328_v39 = vrot.slane %v327_v36, 4  ;;  %v335_v40 = vrot.slane %v334_v37, 4 }
  0x56   : > { %787 = shalt.err (!%p784_p13)
}
  0x57   : > { %624 = dma.vmem_to_hbm [thread:$0]  (%p954_p9), %s448_s30, 32, %s450_s22, %s417_s4   ;;  %v329_v43 = vadd.f32 %v328_v39, %v327_v36  ;;  %v336_v44 = vadd.f32 %v335_v40, %v334_v37  ;;  %vm351_vm6 = vcmp.eq.s32.totalorder %v348_v38, %v349_v41  ;;  %vm352_vm7 = vcmp.eq.s32.totalorder %v348_v38, %v350_v42  ;;  %v400_v18 = vld [vmem:[%s1020_s24] sm:$0x3] }
  0x58   : > { %s429_s23 = scalar_lea.hbm %s1117_s2, %s614_s19  ;;  %s431_s29 = sshll.u32 %s1020_s24, 4  ;;  %s432_s29 = int_to_ptr.vmem [resolvable:$true] %s431_s29 }
  0x59   : > { %v330_v45 = vrot.slane %v329_v43, 2  ;;  %v337_v46 = vrot.slane %v336_v44, 2  ;;  %s433_s30 = sshll.u32 %s429_s23, 4  ;;  %s412_s15 = scalar_lea.sflag [#allocation4], %s989_s6  ;;  %s434_s30 = int_to_ptr.hbm [resolvable:$true] %s433_s30 }
  0x5a   : > { %s802_s22 = sshra.s32 %s434_s30, 4  ;;  %s808_s7 = scalar_lea.hbm %s1117_s2, 4  ;;  %s803_s22 = int_to_ptr.hbm [resolvable:$true] %s802_s22 }
  0x5b   : > { %v331_v47 = vadd.f32 %v330_v45, %v329_v43  ;;  %v338_v48 = vadd.f32 %v337_v46, %v336_v44  ;;  %v354_v49 = vld.sshfl [vmem:[#allocation1] sm:$0xff pattern:$0x75316420]  ;;  %v355_v50 = vld.sshfl [vmem:[#allocation1 + $0x8] sm:$0xff pattern:$0x75316420]  ;;  %p809_p3 = scmp.lt.s32.totalorder %s803_s22, %s1117_s2 }
  0x5c   : > { %v358_v51 = vsel %vm351_vm6, %v354_v49, 0.0  ;;  %v359_v52 = vsel %vm352_vm7, %v355_v50, 0.0  ;;  %s804_s19 = scalar_lea.hbm %s803_s22, 2 }
  0x5d   : > { %v332_v53 = vrot.slane %v331_v47, 1  ;;  %v339_v54 = vrot.slane %v338_v48, 1  ;;  %v360_v55 = vsel %vm298_vm0, %v358_v51, 0.0  ;;  %v367_v56 = vsel %vm298_vm0, %v359_v52, 0.0  ;;  %p805_p0 = scmp.ne.s32.totalorder %s803_s22, %s804_s19  ;;  %p810_p4 = scmp.lt.s32.totalorder %s808_s7, %s804_s19 }
  0x5e   : > { %v361_v57 = vrot.slane %v360_v55, 4  ;;  %v368_v58 = vrot.slane %v367_v56, 4 }
  0x5f   : > { %v333_v59 = vadd.f32 %v332_v53, %v331_v47  ;;  %v340_v60 = vadd.f32 %v339_v54, %v338_v48  ;;  %p806_p1 = pnand %p805_p0, %p954_p9  ;;  %p811_p5 = por %p810_p4, %p809_p3 }
  0x60   : > { %v362_v61 = vadd.f32 %v361_v57, %v360_v55  ;;  %v369_v62 = vadd.f32 %v368_v58, %v367_v56 }
  0x61   : > { %696 = vlog2.f32 %v333_v59  ;;  %p807_p2 = pneg %p806_p1 }
  0x62   : > { %698 = vlog2.f32 %v340_v60  ;;  %v363_v63 = vrot.slane %v362_v61, 2  ;;  %v370_v0 = vrot.slane %v369_v62, 2 }
  0x63   : > { %p812_p6 = pnand %p811_p5, %p807_p2 }
  0x64   : > { %v371_v1 = vadd.f32 %v370_v0, %v369_v62  ;;  %v364_v2 = vadd.f32 %v363_v63, %v362_v61 }
  0x66   : > { %v372_v4 = vrot.slane %v371_v1, 1  ;;  %v365_v8 = vrot.slane %v364_v2, 1 }
  0x67   : > { %v697_v3 = vpop.eup %696 }
  0x68   : > { %v699_v5 = vpop.eup %698  ;;  %v342_v6 = vmul.f32 0.6931472, %v697_v3  ;;  %v373_v11 = vadd.f32 %v372_v4, %v371_v1  ;;  %v366_v12 = vadd.f32 %v365_v8, %v364_v2 }
  0x69   : > { %v344_v7 = vmul.f32 0.6931472, %v699_v5 }
  0x6a   : > { %v345_v9 = vadd.f32 %v342_v6, %v1010_v17 }
  0x6b   : > { %v346_v10 = vadd.f32 %v344_v7, %v1008_v15 }
  0x6c   : > { %v392_v14 = vsub.f32 %v345_v9, %v366_v12 }
  0x6d   : > { %v393_v13 = vsub.f32 %v346_v10, %v373_v11 }
  0x6f   : > { %v396_v16 = vrot.slane %v393_v13, 7 }
  0x71   : > { %v397_v17 = vsel %vm388_vm2, %v392_v14, %v396_v16 }
  0x72   : > { %v399_v15 = vsel %vm1040_vm5, %v397_v17, 0.0 }
  0x73   : > { %v401_v20 = vadd.f32 %v400_v18, %v399_v15 }
  0x75   : > { %406 = vst.msk [vmem:[%s1020_s24] sm:$0x3] %vm1013_vm1, %v401_v20 }
  0x76   : > { %815 = shalt.err (!%p812_p6)
}
  0x77   : > { %623 = dma.vmem_to_hbm [thread:$0]  (%p954_p9), %s432_s29, 32, %s434_s30, %s412_s15  }
  0x78 PF: > { %s461_s6 = sand.u32 1, %s858_s12   ;;  %p635_p7 = pnand %p601_p12, %p961_p11 }
  0x79   : > { %s462_s24 = scalar_lea.sflag [#allocation4], %s461_s6 }
  0x7a   : > { %p636_p8 = pneg %p635_p7 }
  0x7c   : > { %849 = dma.done.wait (%p636_p8), %s462_s24, 32  }
  0x7d   : > { %851 = vsyncadd (%p636_p8), %s462_s24, 4294967264  ;;  %s472_s28 = scalar_lea.sflag [#allocation9], %s461_s6 }
  0x7e   : > { %853 = dma.done.wait (%p636_p8), %s472_s28, 32  }
  0x7f   : > { %855 = vsyncadd (%p636_p8), %s472_s28, 4294967264  ;;  %s26_s17 = sadd.s32 1, %s878_s17   ;;  %s1128_s12 = smov %s862_s13 }
  0x80   : > { %p23_p10 = scmp.ge.s32.totalorder %s26_s17, 4   ;;  %s1129_s13 = smov %s866_s14 }
  0x81   : > { %s1130_s14 = smov %s959_s26  ;;  %s1131_s15 = smov %s874_s16 }
  0x82   : > { %s1132_s16 = smov %s1134_s20  ;;  %25 = sbr.rel (!%p23_p10) target bundleno = 10 (0xa), region = 107 }
  0x87   :  { %478 = vsyncpa [#allocation3], 1 }
  0x88   :  { %480 = vsyncpa [#allocation3 + $0x1], 1 }
  0x89   :  { %481 = vsyncpa [#allocation6], 1 }
  0x8a   :  { %483 = vsyncpa [#allocation6 + $0x1], 1 }
  0x8b   :  { %484 = vsyncpa [#allocation4], 1 }
  0x8c   :  { %486 = vsyncpa [#allocation4 + $0x1], 1 }
  0x8d   :  { %487 = vsyncpa [#allocation9], 1 }
  0x8e   :  { %489 = vsyncpa [#allocation9 + $0x1], 1 }

</bundles_post_ra>
